<compile_context>
chip_gen: v7x
topology: tpu7x:2x2x1
jax: 0.10.0
libtpu: 0.0.40
codegen_flags: <defaults>
</compile_context>

<pallas_src>
import functools

import jax
import jax.numpy as jnp
from jax.experimental import pallas as pl
from jax.experimental.pallas import tpu as pltpu


# ---------------------------------------------------------------------------
# Kernels
# ---------------------------------------------------------------------------

def _cls_kernel(cls_ref,   # (TB, H)   token-0 embeddings (only row DMA'd)
                wb_ref,    # (H, H)    "base" dense weight (resident)
                bb_ref,    # (1, H)
                wp_ref,    # (H, Pp)   projector weight (resident, lane-padded)
                bp_ref,    # (1, Pp)
                out_ref):  # (TB, Pp)
    f32 = jnp.float32
    wb = wb_ref[...]
    bb = bb_ref[...].astype(f32)
    wp = wp_ref[...]
    bp = bp_ref[...].astype(f32)
    pooled = cls_ref[...]                                            # (TB, H)
    hidden = jnp.dot(pooled.astype(wb.dtype), wb,
                     preferred_element_type=f32) + bb                # (TB, H)
    out_ref[...] = (jnp.dot(hidden.astype(wp.dtype), wp,
                            preferred_element_type=f32) + bp).astype(out_ref.dtype)


def _mean_kernel(len_ref,   # (TB, 1)   int32 valid-token counts
                 emb_ref,   # (TB, S, H)
                 wb_ref, bb_ref, wp_ref, bp_ref,
                 out_ref):  # (TB, Pp)
    f32 = jnp.float32
    wb = wb_ref[...]
    bb = bb_ref[...].astype(f32)
    wp = wp_ref[...]
    bp = bp_ref[...].astype(f32)

    emb = emb_ref[...]                                               # input dtype
    tb, s, h = emb.shape
    lengths = len_ref[...]                                           # (TB, 1) int32

    # Prefix mask rebuilt in-kernel; pooling multiply stays in the input dtype
    # (bf16 VALU on v6e/v7x), accumulation in f32.
    tok = jax.lax.broadcasted_iota(jnp.int32, (tb, s, 1), 1)
    valid = tok < lengths[:, None, :]                                # (TB, S, 1)
    masked = jnp.where(valid, emb, jnp.zeros((), emb.dtype))
    num = jnp.sum(masked, axis=1, dtype=f32)                         # (TB, H)

    den = jnp.maximum(lengths.astype(f32), 1e-9)                     # (TB, 1)
    inv = pl.reciprocal(den, approx=True)                            # EUP
    inv = inv * (2.0 - den * inv)                                    # Newton step
    pooled = num * inv                                               # (TB, H)

    # Pool-before-dense: exactly equivalent for any row with >=1 valid token.
    hidden = jnp.dot(pooled.astype(wb.dtype), wb,
                     preferred_element_type=f32) + bb
    out_ref[...] = (jnp.dot(hidden.astype(wp.dtype), wp,
                            preferred_element_type=f32) + bp).astype(out_ref.dtype)


def _max_kernel(seq_chunk,  # static int, divides S
                len_ref,    # (TB, 1) int32
                emb_ref,    # (TB, S, H)
                wb_ref, bb_ref, wp_ref, bp_ref,
                out_ref):   # (TB, Pp)
    f32 = jnp.float32
    wb = wb_ref[...]
    bb = bb_ref[...].astype(f32)
    wp = wp_ref[...]
    bp = bp_ref[...].astype(f32)

    tb, s, h = emb_ref.shape
    lengths = len_ref[...]                                           # (TB, 1) int32
    n_chunks = s // seq_chunk

    def body(c, run_max):
        start = pl.multiple_of(c * seq_chunk, seq_chunk)
        e = emb_ref[:, pl.ds(start, seq_chunk), :]                   # (TB, C, H)
        hid = jnp.dot(e.reshape(tb * seq_chunk, h), wb,
                      preferred_element_type=f32) + bb               # (TB*C, H)
        hid = hid.reshape(tb, seq_chunk, h)
        tok = jax.lax.broadcasted_iota(jnp.int32, (tb, seq_chunk, 1), 1) + start
        hid = jnp.where(tok < lengths[:, None, :], hid, f32(-1e30))
        return jnp.maximum(run_max, jnp.max(hid, axis=1))            # (TB, H)

    init = jnp.full((tb, h), -1e30, f32)
    hidden = jax.lax.fori_loop(0, n_chunks, body, init,
                               unroll=(n_chunks <= 8))
    # -1e30 sentinel stays f32 end-to-end (out dtype is f32).
    out_ref[...] = (jnp.dot(hidden.astype(wp.dtype), wp,
                            preferred_element_type=f32) + bp).astype(out_ref.dtype)


# ---------------------------------------------------------------------------
# Tiling / budget helpers
# ---------------------------------------------------------------------------

def _round_up(n, m):
    return ((n + m - 1) // m) * m


def _device_vmem_bytes():
    try:
        info = pltpu.get_tpu_info()
        v = getattr(info, "vmem_capacity_bytes", None)
        if v:
            return int(v)
    except Exception:
        pass
    return 128 * 1024 * 1024  # v5e/v6e default; v7x reports 64 MiB via get_tpu_info


def _pick_batch_block(batch, per_row_bytes, fixed_bytes, vmem_budget):
    """Largest tb dividing B that fits the VMEM budget; prefer multiples of 8
    and >=2 grid steps (so v7x's two TensorCores both get 'parallel' work)."""
    divisors = [d for d in range(1, batch + 1) if batch % d == 0]
    aligned = [d for d in divisors if d % 8 == 0]
    if aligned:
        cands = [d for d in aligned if d <= batch // 2] or aligned
    else:
        cands = divisors  # tiny/odd batch: keep sublane-friendly whole rows
    fit = [d for d in cands if fixed_bytes + d * per_row_bytes <= vmem_budget]
    if fit:
        return max(fit)
    # TODO(synk): if even the smallest block overflows VMEM, add a sequence-axis
    # grid dimension with an in-VMEM accumulator instead of shrinking tb further.
    return min(cands)


def _pick_seq_chunk(seq, tb, hdim):
    """Sequence chunk for the 'max' path: divides seq, prefers multiples of 8,
    keeps the f32 (tb*chunk, H) intermediate around <= 4 MiB."""
    if seq <= 8:
        return seq
    limit = 4 << 20
    aligned = [c for c in range(8, seq + 1, 8) if seq % c == 0]
    if not aligned:
        return seq  # TODO(synk): unaligned seq lengths fall back to whole-seq
    fitting = [c for c in aligned if tb * c * hdim * 4 <= limit]
    return max(fitting) if fitting else min(aligned)


# ---------------------------------------------------------------------------
# Wrapper
# ---------------------------------------------------------------------------

def text_encoder_forward(emb, attention_mask, wb, bb, wp, bp,
                         embed_method="mean", batch_block=None):
    """emb: (B, S, H), attention_mask: (B, S) -> projected_vec (B, P) float32."""
    B, S, H = emb.shape
    P = wp.shape[1]
    P_pad = _round_up(P, 128)

    # Lane-dense output: pad projector columns so the (tb, P_pad) store is an
    # unmasked vst; padded columns are sliced off after the call.
    bb2 = bb.reshape(1, -1)
    bp2 = bp.reshape(1, -1)
    if P_pad != P:
        wp_p = jnp.pad(wp, ((0, 0), (0, P_pad - P)))
        bp_p = jnp.pad(bp2, ((0, 0), (0, P_pad - P)))
    else:
        wp_p, bp_p = wp, bp2

    dev_vmem = _device_vmem_bytes()
    resident_bytes = (wb.size * wb.dtype.itemsize + bb2.size * bb2.dtype.itemsize
                      + wp_p.size * wp_p.dtype.itemsize + bp_p.size * bp_p.dtype.itemsize)

    emb_itemsize = emb.dtype.itemsize
    s_block = 1 if embed_method == "cls" else S

    # Per-batch-row VMEM footprint (double-buffered pipelined blocks + f32
    # intermediates); lengths block lane-pads to 128.
    per_row = 2 * s_block * H * emb_itemsize + 2 * P_pad * 4 + 2 * 128 * 4
    if embed_method == "mean":
        per_row += s_block * H * emb_itemsize + 4 * H * 4  # where() copy + f32 rows
    else:
        per_row += 3 * H * 4                               # pooled/hidden/run-max rows
    fixed = resident_bytes + (4 << 20 if embed_method == "max" else 0) + (2 << 20)

    vmem_budget = int(0.70 * dev_vmem)
    if batch_block is not None:
        tb = batch_block
        assert B % tb == 0
    else:
        tb = _pick_batch_block(B, per_row, fixed, vmem_budget)

    seq_chunk = _pick_seq_chunk(S, tb, H) if embed_method == "max" else S

    est = fixed + tb * per_row
    vmem_limit = int(min(max(int(est * 1.3) + (4 << 20), 16 << 20),
                         int(0.9 * dev_vmem)))

    grid = (B // tb,)
    resident = pl.BlockSpec(memory_space=pltpu.MemorySpace.VMEM)  # no double-buffer

    # Per-row valid-token counts replace the (B,S,1) float mask stream.
    # TODO(synk): assumes a padding-style (prefix) attention mask.
    lengths = jnp.sum(attention_mask.astype(jnp.int32), axis=1,
                      dtype=jnp.int32).reshape(B, 1)

    if embed_method == "cls":
        cls_rows = emb[:, 0, :]                            # only token 0 read from HBM
        kernel = _cls_kernel
        in_specs = [
            pl.BlockSpec((tb, H), lambda b: (b, 0)),
            resident, resident, resident, resident,
        ]
        args = (cls_rows, wb, bb2, wp_p, bp_p)
    elif embed_method == "mean":
        kernel = _mean_kernel
        in_specs = [
            pl.BlockSpec((tb, 1), lambda b: (b, 0)),       # lengths
            pl.BlockSpec((tb, S, H), lambda b: (b, 0, 0)),  # emb block
            resident, resident, resident, resident,
        ]
        args = (lengths, emb, wb, bb2, wp_p, bp_p)
    elif embed_method == "max":
        kernel = functools.partial(_max_kernel, seq_chunk)
        in_specs = [
            pl.BlockSpec((tb, 1), lambda b: (b, 0)),
            pl.BlockSpec((tb, S, H), lambda b: (b, 0, 0)),
            resident, resident, resident, resident,
        ]
        args = (lengths, emb, wb, bb2, wp_p, bp_p)
    else:
        raise ValueError(f"unsupported embed_method {embed_method}")

    out = pl.pallas_call(
        kernel,
        out_shape=jax.ShapeDtypeStruct((B, P_pad), jnp.float32),
        grid=grid,
        in_specs=in_specs,
        out_specs=pl.BlockSpec((tb, P_pad), lambda b: (b, 0)),
        compiler_params=pltpu.CompilerParams(
            dimension_semantics=("parallel",),
            vmem_limit_bytes=vmem_limit),
    )(*args)
    return out[:, :P] if P_pad != P else out


# ---------------------------------------------------------------------------
# Reference + test
# ---------------------------------------------------------------------------

def _reference(emb, attention_mask, wb, bb, wp, bp, embed_method):
    # Mirrors the original op order: base dense per token -> pooling -> projector.
    hidden = jnp.einsum("bsh,hk->bsk", emb, wb) + bb.reshape(1, 1, -1)
    m = attention_mask.astype(jnp.float32)[:, :, None]
    if embed_method == "cls":
        pooled = hidden[:, 0, :]
    elif embed_method == "mean":
        pooled = jnp.sum(hidden * m, axis=1) / jnp.maximum(jnp.sum(m, axis=1), 1e-9)
    elif embed_method == "max":
        pooled = jnp.max(jnp.where(m > 0, hidden, -1e30), axis=1)
    return pooled @ wp + bp.reshape(1, -1)


if __name__ == "__main__":
    B, S, H, P, VOCAB = 2, 8, 32, 16, 50
    key = jax.random.PRNGKey(0)
    k_tbl, k_ids, k_wb, k_bb, k_wp, k_bp = jax.random.split(key, 6)

    # synthetic deterministic parameters (module __init__ gives only shapes)
    emb_table = jax.random.normal(k_tbl, (VOCAB, H), jnp.float32) * 0.1
    wb = jax.random.normal(k_wb, (H, H), jnp.float32) * 0.1
    bb = jax.random.normal(k_bb, (1, H), jnp.float32) * 0.1
    wp = jax.random.normal(k_wp, (H, P), jnp.float32) * 0.1
    bp = jax.random.normal(k_bp, (1, P), jnp.float32) * 0.1

    # synthetic tokenized batch x = {"input_ids", "attention_mask"} (prefix mask)
    input_ids = jax.random.randint(k_ids, (B, S), 0, VOCAB)
    lengths = jnp.array([5, 3], dtype=jnp.int32)
    attention_mask = (jnp.arange(S)[None, :] < lengths[:, None]).astype(jnp.float32)

    # glue: embedding lookup stays in plain JAX
    emb = emb_table[input_ids]                                   # (B, S, H)

    # f32 path: all three pooling methods
    for method in ("mean", "cls", "max"):
        got = text_encoder_forward(emb, attention_mask, wb, bb, wp, bp,
                                   embed_method=method)
        jax.block_until_ready(got)
        ref = _reference(emb, attention_mask, wb, bb, wp, bp, method)
        assert got.shape == (B, P)
        assert jnp.allclose(got, ref, atol=1e-3, rtol=1e-3), method

    # bf16 weights/activations (v6e/v7x MXU path); accumulation & pooling in f32
    got_bf16 = text_encoder_forward(emb.astype(jnp.bfloat16), attention_mask,
                                    wb.astype(jnp.bfloat16), bb,
                                    wp.astype(jnp.bfloat16), bp,
                                    embed_method="mean")
    jax.block_until_ready(got_bf16)
    ref = _reference(emb, attention_mask, wb, bb, wp, bp, "mean")
    assert jnp.allclose(got_bf16, ref, atol=5e-2, rtol=5e-2)

    print("KERNEL_OK")
</pallas_src>

<mosaic_0001>
module attributes {stable_mosaic.version = 11 : i64} {
  func.func @_mean_kernel(%arg0: i32, %arg1: memref<2x1xi32, #tpu.memory_space<vmem>>, %arg2: memref<2x8x32xf32, #tpu.memory_space<vmem>>, %arg3: memref<32x32xf32, #tpu.memory_space<vmem>>, %arg4: memref<1x32xf32, #tpu.memory_space<vmem>>, %arg5: memref<32x128xf32, #tpu.memory_space<vmem>>, %arg6: memref<1x128xf32, #tpu.memory_space<vmem>>, %arg7: memref<2x128xf32, #tpu.memory_space<vmem>>) attributes {dimension_semantics = [#tpu.dimension_semantics<parallel>], iteration_bounds = array<i64: 1>, scalar_prefetch = 0 : i64, scratch_operands = 0 : i64, tpu.core_type = #tpu.core_type<tc>, window_params = [{transform_indices = @transform_0, window_bounds = array<i64: 2, 1>}, {transform_indices = @transform_1, window_bounds = array<i64: 2, 8, 32>}, {pipeline_mode = #tpu.pipeline_mode<synchronous>, transform_indices = @transform_2, window_bounds = array<i64: 32, 32>}, {pipeline_mode = #tpu.pipeline_mode<synchronous>, transform_indices = @transform_3, window_bounds = array<i64: 1, 32>}, {pipeline_mode = #tpu.pipeline_mode<synchronous>, transform_indices = @transform_4, window_bounds = array<i64: 32, 128>}, {pipeline_mode = #tpu.pipeline_mode<synchronous>, transform_indices = @transform_5, window_bounds = array<i64: 1, 128>}, {transform_indices = @transform_6, window_bounds = array<i64: 2, 128>}]} {
    %c0 = arith.constant 0 : index
    %c0_0 = arith.constant 0 : index
    %0 = vector.load %arg3[%c0, %c0_0] : memref<32x32xf32, #tpu.memory_space<vmem>>, vector<32x32xf32>
    %c0_1 = arith.constant 0 : index
    %c0_2 = arith.constant 0 : index
    %1 = vector.load %arg4[%c0_1, %c0_2] : memref<1x32xf32, #tpu.memory_space<vmem>>, vector<1x32xf32>
    %c0_3 = arith.constant 0 : index
    %c0_4 = arith.constant 0 : index
    %2 = vector.load %arg5[%c0_3, %c0_4] : memref<32x128xf32, #tpu.memory_space<vmem>>, vector<32x128xf32>
    %c0_5 = arith.constant 0 : index
    %c0_6 = arith.constant 0 : index
    %3 = vector.load %arg6[%c0_5, %c0_6] : memref<1x128xf32, #tpu.memory_space<vmem>>, vector<1x128xf32>
    %c0_7 = arith.constant 0 : index
    %c0_8 = arith.constant 0 : index
    %c0_9 = arith.constant 0 : index
    %4 = vector.load %arg2[%c0_7, %c0_8, %c0_9] : memref<2x8x32xf32, #tpu.memory_space<vmem>>, vector<2x8x32xf32>
    %c0_10 = arith.constant 0 : index
    %c0_11 = arith.constant 0 : index
    %5 = vector.load %arg1[%c0_10, %c0_11] : memref<2x1xi32, #tpu.memory_space<vmem>>, vector<2x1xi32>
    %6 = tpu.iota {dimensions = array<i32: 1>} : vector<2x8x1xi32>
    %7 = vector.shape_cast %5 : vector<2x1xi32> to vector<2x1x1xi32>
    %8 = vector.broadcast %7 : vector<2x1x1xi32> to vector<2x8x1xi32>
    %9 = arith.cmpi slt, %6, %8 : vector<2x8x1xi32>
    %cst = arith.constant 0.000000e+00 : f32
    %10 = vector.shape_cast %9 : vector<2x8x1xi1> to vector<2x8x1xi1>
    %11 = vector.broadcast %10 : vector<2x8x1xi1> to vector<2x8x32xi1>
    %12 = vector.broadcast %cst : f32 to vector<2x8x32xf32>
    %13 = arith.select %11, %4, %12 : vector<2x8x32xi1>, vector<2x8x32xf32>
    %cst_12 = arith.constant dense<0.000000e+00> : vector<2x32xf32>
    %14 = vector.multi_reduction <add>, %13, %cst_12 [1] : vector<2x8x32xf32> to vector<2x32xf32>
    %15 = arith.sitofp %5 : vector<2x1xi32> to vector<2x1xf32>
    %cst_13 = arith.constant 9.99999971E-10 : f32
    %16 = vector.broadcast %cst_13 : f32 to vector<2x1xf32>
    %17 = arith.maximumf %15, %16 : vector<2x1xf32>
    %18 = tpu.reciprocal %17 {approx = true} : vector<2x1xf32> -> vector<2x1xf32>
    %19 = arith.mulf %17, %18 : vector<2x1xf32>
    %cst_14 = arith.constant 2.000000e+00 : f32
    %20 = vector.broadcast %cst_14 : f32 to vector<2x1xf32>
    %21 = arith.subf %20, %19 : vector<2x1xf32>
    %22 = arith.mulf %18, %21 : vector<2x1xf32>
    %23 = vector.broadcast %22 : vector<2x1xf32> to vector<2x32xf32>
    %24 = arith.mulf %14, %23 : vector<2x32xf32>
    %cst_15 = arith.constant dense<0.000000e+00> : vector<2x32xf32>
    %25 = tpu.matmul %24, %0, %cst_15 {dimension_numbers = #tpu.dot_dimension_numbers<[1], [0], [0], [1], [0, 0, 1, 1], [], []>} : vector<2x32xf32>, vector<32x32xf32>, vector<2x32xf32> -> vector<2x32xf32>
    %26 = vector.broadcast %1 : vector<1x32xf32> to vector<2x32xf32>
    %27 = arith.addf %25, %26 : vector<2x32xf32>
    %cst_16 = arith.constant dense<0.000000e+00> : vector<2x128xf32>
    %28 = tpu.matmul %27, %2, %cst_16 {dimension_numbers = #tpu.dot_dimension_numbers<[1], [0], [0], [1], [0, 0, 1, 1], [], []>} : vector<2x32xf32>, vector<32x128xf32>, vector<2x128xf32> -> vector<2x128xf32>
    %29 = vector.broadcast %3 : vector<1x128xf32> to vector<2x128xf32>
    %30 = arith.addf %28, %29 : vector<2x128xf32>
    %c0_17 = arith.constant 0 : index
    %c0_18 = arith.constant 0 : index
    %31 = vector.load %arg7[%c0_17, %c0_18] : memref<2x128xf32, #tpu.memory_space<vmem>>, vector<2x128xf32>
    tpu.vector_store %arg7[%c0_17, %c0_18], %30 {strides = array<i32>} : memref<2x128xf32, #tpu.memory_space<vmem>>, vector<2x128xf32>,
    return
  }
  func.func @transform_0(%arg0: i32) -> (i32, i32) {
    %c0_i32 = arith.constant 0 : i32
    %c0_i32_0 = arith.constant 0 : i32
    return %arg0, %c0_i32 : i32, i32
  }
  func.func @transform_1(%arg0: i32) -> (i32, i32, i32) {
    %c0_i32 = arith.constant 0 : i32
    %c0_i32_0 = arith.constant 0 : i32
    %c0_i32_1 = arith.constant 0 : i32
    return %arg0, %c0_i32, %c0_i32_0 : i32, i32, i32
  }
  func.func @transform_2(%arg0: i32) -> (i32, i32) {
    %c0_i32 = arith.constant 0 : i32
    %c0_i32_0 = arith.constant 0 : i32
    %c0_i32_1 = arith.constant 0 : i32
    return %c0_i32, %c0_i32_0 : i32, i32
  }
  func.func @transform_3(%arg0: i32) -> (i32, i32) {
    %c0_i32 = arith.constant 0 : i32
    %c0_i32_0 = arith.constant 0 : i32
    %c0_i32_1 = arith.constant 0 : i32
    return %c0_i32, %c0_i32_0 : i32, i32
  }
  func.func @transform_4(%arg0: i32) -> (i32, i32) {
    %c0_i32 = arith.constant 0 : i32
    %c0_i32_0 = arith.constant 0 : i32
    %c0_i32_1 = arith.constant 0 : i32
    return %c0_i32, %c0_i32_0 : i32, i32
  }
  func.func @transform_5(%arg0: i32) -> (i32, i32) {
    %c0_i32 = arith.constant 0 : i32
    %c0_i32_0 = arith.constant 0 : i32
    %c0_i32_1 = arith.constant 0 : i32
    return %c0_i32, %c0_i32_0 : i32, i32
  }
  func.func @transform_6(%arg0: i32) -> (i32, i32) {
    %c0_i32 = arith.constant 0 : i32
    %c0_i32_0 = arith.constant 0 : i32
    return %arg0, %c0_i32 : i32, i32
  }
}

</mosaic_0001>

<bundles_post_ra>
// kernel: tpu_custom_call.1
= control target key start
LH: loop header
LB: loop body
LE: loop exit
PB: predicated region body
PF: predicated region fallthrough
CT: control target
= control target key end

     0   :  { %11 = vsyncpa [#allocation3], 0  ;;  %s613_s0 = inlined_call_operand.vmem [shape: s32[2,1], index: 0, kind: input, shape index: {}]   ;;  %s614_s1 = inlined_call_operand.hbm [shape: f32[2,8,32], index: 1, kind: input, shape index: {}]   ;;  %s615_s2 = inlined_call_operand.hbm [shape: f32[32,32], index: 2, kind: input, shape index: {}]   ;;  %s616_s3 = inlined_call_operand.vmem [shape: f32[1,32], index: 3, kind: input, shape index: {}]   ;;  %s617_s4 = inlined_call_operand.hbm [shape: f32[32,128], index: 4, kind: input, shape index: {}]   ;;  %s618_s5 = inlined_call_operand.vmem [shape: f32[1,128], index: 5, kind: input, shape index: {}]   ;;  %s619_s6 = inlined_call_operand.hbm [shape: f32[2,128], index: 6, kind: output, shape index: {}]  }
   0x1   :  { %12 = vsyncpa [#allocation6], 0 }
   0x2   :  { %13 = vsyncpa [#allocation4], 0  ;;  %s490_s21 = smov [#allocation5]   ;;  %s491_s23 = smov [#allocation2]  }
   0x3   :  { %s33_s22 = sshll.u32 %s490_s21, 4  ;;  %s21_s24 = sshll.u32 %s491_s23, 4  ;;  %s34_s22 = int_to_ptr.vmem [resolvable:$true] %s33_s22  ;;  %s536_s24 = int_to_ptr.vmem [resolvable:$true] %s21_s24 }
   0x4   :  { %s396_s27 = scalar_lea.hbm %s615_s2, 512 }
   0x5   :  { %p397_p0 = scmp.ne.s32.totalorder %s615_s2, %s396_s27  ;;  %p400_p1 = scmp.lt.u32.totalorder %s396_s27, %s615_s2 }
   0x7   :  { %p402_p2 = pnand %p400_p1, %p397_p0 }
   0x9   :  { %405 = shalt.err (!%p402_p2)
}
   0xa   :  { %s406_s8 = scalar_lea.vmem %s34_s22, 512  ;;  %p411_p4 = scmp.lt.s32.totalorder %s34_s22, %s34_s22 }
   0xb   :  { %p407_p3 = scmp.ne.s32.totalorder %s34_s22, %s406_s8  ;;  %p412_p5 = scmp.lt.s32.totalorder %s406_s8, %s406_s8 }
   0xd   :  { %p413_p6 = por %p412_p5, %p411_p4 }
   0xf   :  { %p414_p7 = pnand %p413_p6, %p407_p3 }
  0x11   :  { %417 = shalt.err (!%p414_p7)
}
  0x12   :  { %s492_s9 = smov 128   ;;  %s493_s10 = smov 8  }
  0x13   :  { %39 = dma.hbm_to_vmem [thread:$0]  %s615_s2, 512, %s34_s22, [#allocation6], %s492_s9, %s492_s9, %s493_s10  }
  0x14   :  { %s418_s15 = scalar_lea.hbm %s614_s1, 256 }
  0x15   :  { %p419_p8 = scmp.ne.s32.totalorder %s614_s1, %s418_s15  ;;  %p422_p9 = scmp.lt.u32.totalorder %s418_s15, %s614_s1 }
  0x17   :  { %p424_p10 = pnand %p422_p9, %p419_p8 }
  0x19   :  { %427 = shalt.err (!%p424_p10)
}
  0x1a   :  { %s428_s20 = scalar_lea.vmem %s536_s24, 256  ;;  %p433_p12 = scmp.lt.s32.totalorder %s536_s24, %s536_s24 }
  0x1b   :  { %p429_p11 = scmp.ne.s32.totalorder %s536_s24, %s428_s20  ;;  %p434_p13 = scmp.lt.s32.totalorder %s428_s20, %s428_s20 }
  0x1d   :  { %p435_p0 = por %p434_p13, %p433_p12 }
  0x1f   :  { %p436_p1 = pnand %p435_p0, %p429_p11 }
  0x21   :  { %439 = shalt.err (!%p436_p1)
}
  0x22   :  { %27 = dma.hbm_to_vmem [thread:$0]  %s614_s1, 256, %s536_s24, [#allocation3], %s492_s9, %s492_s9, %s493_s10  }
  0x23   :  { %s494_s22 = smov [#allocation7]   ;;  %s440_s27 = scalar_lea.hbm %s617_s4, 512 }
  0x24   :  { %s47_s23 = sshll.u32 %s494_s22, 4  ;;  %p441_p2 = scmp.ne.s32.totalorder %s617_s4, %s440_s27  ;;  %s48_s23 = int_to_ptr.vmem [resolvable:$true] %s47_s23 }
  0x25   :  { %p444_p3 = scmp.lt.u32.totalorder %s440_s27, %s617_s4 }
  0x27   :  { %p446_p4 = pnand %p444_p3, %p441_p2 }
  0x29   :  { %449 = shalt.err (!%p446_p4)
}
  0x2a   :  { %s450_s8 = scalar_lea.vmem %s48_s23, 512  ;;  %p455_p6 = scmp.lt.s32.totalorder %s48_s23, %s48_s23 }
  0x2b   :  { %p451_p5 = scmp.ne.s32.totalorder %s48_s23, %s450_s8  ;;  %p456_p7 = scmp.lt.s32.totalorder %s450_s8, %s450_s8 }
  0x2d   :  { %p457_p8 = por %p456_p7, %p455_p6 }
  0x2f   :  { %p458_p9 = pnand %p457_p8, %p451_p5 }
  0x31   :  { %461 = shalt.err (!%p458_p9)
}
  0x32   :  { %53 = dma.hbm_to_vmem [thread:$0]  %s617_s4, 512, %s48_s23, [#allocation6], %s492_s9, %s492_s9, %s493_s10  }
  0x33   :  { %484 = dma.done.wait [#allocation3], 256  }
  0x34   :  { %485 = vsyncadd [#allocation3], 4294967040 }
  0x35   :  { %486 = dma.done.wait [#allocation6], 1024  }
  0x36   :  { %487 = vsyncadd [#allocation6], 4294966272  ;;  %v78_v0 = vlaneseq  ;;  %v495_v1 = vmov 0   ;;  %v496_v2 = vmov 1966171168   ;;  %v65_v23 = vld [vmem:[#allocation5] sm:$0xff] }
  0x37   :  { %392 = vset.pattern.permute.xlu0 %v495_v1  ;;  %v81_v3 = vunpack.c.l.s4 %v496_v2  ;;  %393 = vset.pattern.permute.xlu1 %v495_v1  ;;  %v77_v7 = vld [vmem:[%s613_s0] sm:$0x3]  ;;  %v66_v24 = vld [vmem:[#allocation5 + $0x8] sm:$0xff]  ;;  %v497_v26 = vmov 0.0|0.0   ;;  %v68_v28 = vld [vmem:[#allocation5 + $0x18] sm:$0xff]  ;;  %vm498_vm2 = vmmov 0  }
  0x38   :  { %v79_v4 = vshrl.u32 %v78_v0, 7  ;;  %v139_v9 = vcvt.s32.f32 %v77_v7  ;;  %v370_v25 = vpack.c.bf16 %v66_v24, %v65_v23  ;;  %369 = vmatprep.subr.bf16.mxu0 %v497_v26  ;;  %375 = vmatprep.subr.bf16.mxu1 %v497_v26  ;;  %v67_v27 = vld [vmem:[#allocation5 + $0x10] sm:$0xff]  ;;  %v499_v30 = vmov 0.0   ;;  %v70_v31 = vld [vmem:[#allocation7] sm:$0xff]  ;;  %v71_v32 = vld [vmem:[#allocation7 + $0x8] sm:$0xff]  ;;  %s500_s13 = smov [#allocation8]  }
  0x39   :  { %v82_v5 = vunpack.c.0.s8 %v81_v3  ;;  %v373_v29 = vpack.c.bf16 %v68_v28, %v67_v27  ;;  %355 = vmatprep.mubr.msk.f32.mxu0 %vm498_vm2, %v499_v30  ;;  %366 = vmatprep.mubr.msk.f32.mxu1 %vm498_vm2, %v499_v30  ;;  %v376_v33 = vpack.c.bf16 %v71_v32, %v70_v31  ;;  %v76_v34 = vld [vmem:[#allocation2 + $0x8] sm:$0xff]  ;;  %vm124_vm3 = vcmask 261120   ;;  %v75_v38 = vld [vmem:[#allocation2] sm:$0xff]  ;;  %s323_s14 = sshll.u32 %s500_s13, 4  ;;  %s324_s14 = int_to_ptr.vmem [resolvable:$true] %s323_s14 }
  0x3a   :  { %v104_v11 = vsub.s32 0, %v79_v4  ;;  %v140_v13 = vmax.f32 %v139_v9, 1e-09  ;;  %371 = vmatpush3.bf16.msra.mxu0 %v370_v25  ;;  %vm163_vm6 = vcmask 1041409   ;;  %v72_v60 = vld [vmem:[#allocation7 + $0x10] sm:$0xff]  ;;  %v73_v61 = vld [vmem:[#allocation7 + $0x18] sm:$0xff]  ;;  %p467_p11 = scmp.lt.s32.totalorder %s324_s14, %s324_s14 }
  0x3b   :  { %v85_v6 = vsub.s32 %v82_v5, %v79_v4  ;;  %372 = vmatprep.subr.bf16.mxu0 %v497_v26  ;;  %377 = vmatpush3.bf16.msra.mxu1 %v376_v33  ;;  %v379_v62 = vpack.c.bf16 %v73_v61, %v72_v60  ;;  %v333_v63 = vld [vmem:[%s616_s3] ss:$0 sm:$0xff]  ;;  %s462_s15 = scalar_lea.vmem %s324_s14, 32 }
  0x3c   :  { %394 = vrcp.f32 %v140_v13  ;;  %378 = vmatprep.subr.bf16.mxu1 %v497_v26  ;;  %v335_v3 = vld [vmem:[%s618_s5] ss:$0 sm:$0xff]  ;;  %p463_p10 = scmp.ne.s32.totalorder %s324_s14, %s462_s15  ;;  %p468_p12 = scmp.lt.s32.totalorder %s462_s15, %s462_s15 }
  0x3d   :  { %v86_v8 = vrot.slane %v77_v7, %v85_v6 }
  0x3e   :  { %374 = vmatpush3.bf16.msra.mxu0 %v373_v29  ;;  %p469_p13 = por %p468_p12, %p467_p11 }
  0x3f   :  { %v87_v10 = vcombine.high %v86_v8, %v86_v8  ;;  %v94_v12 = vrot.slane %v86_v8, %v85_v6  ;;  %380 = vmatpush3.bf16.msra.mxu1 %v379_v62 }
  0x40   :  { %p470_p0 = pnand %p469_p13, %p463_p10 }
  0x41   :  { %v101_v14 = vrot.slane %v87_v10, %v85_v6  ;;  %v105_v15 = vrot.slane %v94_v12, %v104_v11 }
  0x43   :  { %v109_v16 = vrot.slane %v101_v14, %v104_v11  ;;  %vm110_vm1 = vcmp.lt.s32.totalorder %v79_v4, %v105_v15 }
  0x44   :  { %v112_v18 = vsel %vm110_vm1, 1, %v495_v1 }
  0x45   :  { %vm111_vm0 = vcmp.lt.s32.totalorder %v79_v4, %v109_v16 }
  0x46   :  { %v113_v17 = vsel %vm111_vm0, 1, %v495_v1  ;;  %v395_v19 = vpop.eup %394 }
  0x47   :  { %118 = vperm.xlu0 %392, %v113_v17   ;;  %v142_v20 = vmul.f32 %v395_v19, %v140_v13 }
  0x49   :  { %v143_v21 = vsub.f32 2.0, %v142_v20 }
  0x4b   :  { %115 = vperm.xlu0 %392, %v112_v18   ;;  %v144_v22 = vmul.f32 %v395_v19, %v143_v21 }
  0x4d   :  { %147 = vperm.xlu1 %393, %v144_v22  }
  0xc6   :  { %v119_v35 = vpop.permute.xlu0 %118 }
  0xc7   :  { %vm121_vm4 = vcmp.eq.s32.totalorder %v119_v35, 1 }
  0xc8   :  { %v123_v36 = vsel %vm121_vm4, %v76_v34, 0.0 }
  0xc9   :  { %v132_v37 = vsel %vm124_vm3, %v123_v36, 0.0 }
  0xca   :  { %v133_v39 = vrot.slane %v132_v37, 4  ;;  %v116_v40 = vpop.permute.xlu0 %115 }
  0xcb   :  { %vm120_vm5 = vcmp.eq.s32.totalorder %v116_v40, 1 }
  0xcc   :  { %v134_v41 = vadd.f32 %v133_v39, %v132_v37  ;;  %v122_v42 = vsel %vm120_vm5, %v75_v38, 0.0  ;;  %v148_v48 = vpop.permute.xlu1 %147 }
  0xcd   :  { %v125_v43 = vsel %vm124_vm3, %v122_v42, 0.0  ;;  %v149_v51 = vrot.slane %v148_v48, 1 }
  0xce   :  { %v135_v44 = vrot.slane %v134_v41, 2  ;;  %v126_v45 = vrot.slane %v125_v43, 4 }
  0xd0   :  { %v136_v46 = vadd.f32 %v135_v44, %v134_v41  ;;  %v127_v47 = vadd.f32 %v126_v45, %v125_v43 }
  0xd2   :  { %v128_v49 = vrot.slane %v127_v47, 2  ;;  %v137_v50 = vrot.slane %v136_v46, 1 }
  0xd4   :  { %v129_v52 = vadd.f32 %v128_v49, %v127_v47  ;;  %v138_v53 = vadd.f32 %v137_v50, %v136_v46 }
  0xd6   :  { %v130_v54 = vrot.slane %v129_v52, 1  ;;  %v153_v55 = vmul.f32 %v149_v51, %v138_v53 }
  0xd8   :  { %v131_v56 = vadd.f32 %v130_v54, %v129_v52  ;;  %v162_v58 = vrot.slane %v153_v55, 7 }
  0xda   :  { %v152_v57 = vmul.f32 %v148_v48, %v131_v56 }
  0xdc   :  { %v164_v59 = vsel %vm163_vm6, %v162_v58, %v152_v57 }
  0xdd   :  { %356 = vmatmul.mubr.msk.f32.vlgmr.msra.gmra.mrb[0].mxu0 %vm124_vm3, %v164_v59 }
 0x1b0   :  { %v233_v0 = vpop.f32.mrb[0].mxu0 }
 0x1b1   :  { %v234_v1 = vadd.f32 %v333_v63, %v233_v0  ;;  %v357_v2 = vpop.f32.mrb[1].mxu0 }
 0x1b3   :  { %367 = vmatmul.mubr.msk.f32.vlgmr.msra.gmra.mrb[0].mxu1 %vm124_vm3, %v234_v1 }
 0x286   :  { %v312_v4 = vpop.f32.mrb[0].mxu1 }
 0x287   :  { %v313_v5 = vadd.f32 %v335_v3, %v312_v4  ;;  %v368_v6 = vpop.f32.mrb[1].mxu1 }
 0x289   :  { %316 = vst [vmem:[#allocation8] sm:$0x3] %v313_v5 }
 0x28a   :  { %473 = shalt.err (!%p470_p0)
}
 0x28b   :  { %s474_s17 = scalar_lea.hbm %s619_s6, 32 }
 0x28c   :  { %p475_p1 = scmp.ne.s32.totalorder %s619_s6, %s474_s17  ;;  %p478_p2 = scmp.lt.u32.totalorder %s474_s17, %s619_s6 }
 0x28e   :  { %p480_p3 = pnand %p478_p2, %p475_p1 }
 0x290   :  { %483 = shalt.err (!%p480_p3)
}
 0x291   :  { %326 = dma.vmem_to_hbm [thread:$0]  %s324_s14, 32, %s619_s6, [#allocation4]  }
 0x292   :  { %488 = dma.done.wait [#allocation4], 32  }
 0x293   :  { %489 = vsyncadd [#allocation4], 4294967264 }
 0x294   :  { %330 = vsyncpa [#allocation3], 1 }
 0x295   :  { %331 = vsyncpa [#allocation6], 1 }
 0x296   :  { %332 = vsyncpa [#allocation4], 1 }

</bundles_post_ra>
